<compile_context>
chip_gen: v7x
topology: tpu7x:2x2x1
jax: 0.10.0
libtpu: 0.0.40
codegen_flags: <defaults>
</compile_context>

<pallas_src>
import functools

import jax
import jax.numpy as jnp
from jax.experimental import pallas as pl
from jax.experimental.pallas import tpu as pltpu


def _round_up(x, m):
    return ((x + m - 1) // m) * m


def _mvsdpa_kernel(q_ref, k_ref, v_ref, out_ref, attn_ref, *, inv_temperature):
    # q_ref: (TB, Dk), k_ref: (TB, L, Dk), v_ref: (TB, L, Dv)
    q = q_ref[...]
    k = k_ref[...]
    v = v_ref[...]

    # scores[b, l] = sum_d q[b, d] * k[b, l, d]
    # VPU broadcast-multiply + XLU lane reduction; L stays on sublanes in the
    # (TB, L, 1) intermediate (no per-batch M=1 MXU matmul loop).
    prod = q[:, None, :] * k                                         # (TB, L, Dk)
    s = jnp.sum(prod.astype(jnp.float32), axis=-1, keepdims=True)    # (TB, L, 1) f32
    s = s * inv_temperature                                          # scale f32 scores

    # Numerically stable softmax over L (sublane reductions).
    m = jnp.max(s, axis=1, keepdims=True)                            # (TB, 1, 1)
    e = jnp.exp(s - m)
    denom = jnp.sum(e, axis=1, keepdims=True)
    attn = e / denom                                                 # exact division

    # TODO(synk): training-mode attention dropout not implemented (inference identity).

    # out[b, d] = sum_l attn[b, l] * v[b, l, d]
    # attn broadcast over Dv lanes, sublane reduction over L, f32 accumulation.
    o = jnp.sum(attn * v.astype(jnp.float32), axis=1)                # (TB, Dv) f32

    out_ref[...] = o.astype(out_ref.dtype)
    attn_ref[...] = attn[:, :, 0].astype(attn_ref.dtype)             # (TB, L)


def _mvsdpa_masked_kernel(q_ref, k_ref, v_ref, bias_ref, out_ref, attn_ref,
                          *, inv_temperature):
    # bias_ref: (TB, L) f32 additive bias (0 where valid, -inf where masked).
    q = q_ref[...]
    k = k_ref[...]
    v = v_ref[...]

    prod = q[:, None, :] * k                                         # (TB, L, Dk)
    s = jnp.sum(prod.astype(jnp.float32), axis=-1, keepdims=True)    # (TB, L, 1)
    s = s * inv_temperature + bias_ref[...][:, :, None]              # masked_fill(-inf)

    m = jnp.max(s, axis=1, keepdims=True)
    e = jnp.exp(s - m)
    denom = jnp.sum(e, axis=1, keepdims=True)
    attn = e / denom

    o = jnp.sum(attn * v.astype(jnp.float32), axis=1)                # (TB, Dv)

    out_ref[...] = o.astype(out_ref.dtype)
    attn_ref[...] = attn[:, :, 0].astype(attn_ref.dtype)


def _choose_block_b(nb, l, dk, dv, q_dt, k_dt, v_dt, out_dt, attn_dt, has_mask,
                    vmem_limit_bytes):
    """Padding-aware batch-tile selection."""
    if nb < 8:
        return max(1, nb)                 # block dim == full dim satisfies (8,128) rule

    def item(dt):
        return jnp.dtype(dt).itemsize

    def sub(dt):                          # sublane multiple for the dtype's VMEM tiling
        return max(8, 32 // item(dt))

    lanes_dk = _round_up(dk, 128)
    lanes_dv = _round_up(dv, 128)
    lanes_l = _round_up(l, 128)
    l8 = _round_up(l, 8)

    # Padded VMEM bytes per batch row for the double-buffered pallas buffers.
    k_row = _round_up(l, sub(k_dt)) * lanes_dk * item(k_dt)
    v_row = _round_up(l, sub(v_dt)) * lanes_dv * item(v_dt)
    q_row = lanes_dk * item(q_dt)
    out_row = lanes_dv * item(out_dt)
    attn_row = lanes_l * item(attn_dt)
    bias_row = lanes_l * 4 if has_mask else 0
    io_row = 2 * (k_row + v_row + q_row + out_row + attn_row + bias_row)

    # Rough in-kernel f32 temporaries: q*k product, attn*v product, softmax temps.
    tmp_row = l8 * (lanes_dk + lanes_dv) * 4 + 3 * l8 * 128 * 4
    per_row = io_row + tmp_row

    # Stay well inside the scoped VMEM limit (the estimate is approximate).
    bb_vmem = max(8, (vmem_limit_bytes // 2) // per_row)

    # ~8 MiB of real (unpadded) k+v HBM traffic per tile amortizes the
    # ~0.35 us per-grid-step overhead on every generation.
    hbm_row = l * (dk * item(k_dt) + dv * item(v_dt))
    bb_hbm = max(8, (8 * 1024 * 1024) // max(hbm_row, 1))

    bb = min(bb_vmem, bb_hbm)
    # Keep at least 2 grid steps so v7x's two TensorCores both get work.
    bb = min(bb, _round_up(pl.cdiv(nb, 2), 8))
    bb = max(8, (bb // 8) * 8)
    return int(bb)


def matrix_vector_attention(q, k, v, temperature, mask=None, *,
                            block_b=None, vmem_limit_bytes=48 * 1024 * 1024):
    """Pallas TPU implementation of MatrixVectorScaledDotProductAttention.forward.

    q: (NB, Dk), k: (NB, L, Dk), v: (NB, L, Dv), mask: optional (NB, L) bool
    (True == masked out).  Returns (output (NB, Dv), attn (NB, L)).
    """
    nb, dk = q.shape
    nb_k, l, dk_k = k.shape
    nb_v, l_v, dv = v.shape
    assert nb_k == nb and dk_k == dk and nb_v == nb and l_v == l

    out_dtype = q.dtype
    attn_dtype = q.dtype
    inv_temperature = 1.0 / float(temperature)

    if block_b is None:
        block_b = _choose_block_b(nb, l, dk, dv, q.dtype, k.dtype, v.dtype,
                                  out_dtype, attn_dtype, mask is not None,
                                  vmem_limit_bytes)
    else:
        block_b = int(block_b)
        if nb < 8:
            block_b = nb
        else:
            block_b = max(8, (block_b // 8) * 8)
            block_b = min(block_b, _round_up(nb, 8))

    # No wrapper-side padding of q/k/v: the grid is cdiv(NB, block_b) and Pallas
    # masks the ragged last block (batch rows are independent, so padded-row
    # garbage never reaches a valid output row).
    grid = (pl.cdiv(nb, block_b),)

    q_spec = pl.BlockSpec((block_b, dk), lambda i: (i, 0))
    k_spec = pl.BlockSpec((block_b, l, dk), lambda i: (i, 0, 0))
    v_spec = pl.BlockSpec((block_b, l, dv), lambda i: (i, 0, 0))
    out_spec = pl.BlockSpec((block_b, dv), lambda i: (i, 0))
    attn_spec = pl.BlockSpec((block_b, l), lambda i: (i, 0))

    out_shape = (
        jax.ShapeDtypeStruct((nb, dv), out_dtype),
        jax.ShapeDtypeStruct((nb, l), attn_dtype),
    )

    compiler_params = pltpu.CompilerParams(
        dimension_semantics=("parallel",),
        vmem_limit_bytes=vmem_limit_bytes,
    )

    if mask is None:
        kernel = functools.partial(_mvsdpa_kernel, inv_temperature=inv_temperature)
        out, attn = pl.pallas_call(
            kernel,
            out_shape=out_shape,
            grid=grid,
            in_specs=[q_spec, k_spec, v_spec],
            out_specs=[out_spec, attn_spec],
            compiler_params=compiler_params,
        )(q, k, v)
    else:
        # Additive -inf bias reproduces masked_fill(mask, -inf) exactly: masked
        # probabilities are exactly 0, fully-masked rows give NaN like torch.
        mask = mask.astype(jnp.bool_)
        bias = jnp.where(mask, -jnp.inf, 0.0).astype(jnp.float32)
        bias_spec = pl.BlockSpec((block_b, l), lambda i: (i, 0))
        kernel = functools.partial(_mvsdpa_masked_kernel,
                                   inv_temperature=inv_temperature)
        out, attn = pl.pallas_call(
            kernel,
            out_shape=out_shape,
            grid=grid,
            in_specs=[q_spec, k_spec, v_spec, bias_spec],
            out_specs=[out_spec, attn_spec],
            compiler_params=compiler_params,
        )(q, k, v, bias)

    return out, attn


def _reference(q, k, v, temperature, mask=None):
    attn = jnp.sum(q[:, None, :] * k, axis=2) / temperature
    if mask is not None:
        attn = jnp.where(mask, -jnp.inf, attn)
    attn = jax.nn.softmax(attn, axis=1)
    out = jnp.sum(attn[:, :, None] * v, axis=1)
    return out, attn


if __name__ == "__main__":
    key = jax.random.PRNGKey(0)
    kq, kk, kv, km = jax.random.split(key, 4)

    nb, l, dk, dv = 48, 8, 32, 32          # (n*b, l, d_k, d_v)
    temperature = float(dk) ** 0.5

    q = jax.random.normal(kq, (nb, dk), dtype=jnp.float32)
    k = jax.random.normal(kk, (nb, l, dk), dtype=jnp.float32)
    v = jax.random.normal(kv, (nb, l, dv), dtype=jnp.float32)

    # Unmasked path, auto tile (block_b=24 -> 2 parallel grid steps, no padding).
    out, attn = matrix_vector_attention(q, k, v, temperature)
    out = jax.block_until_ready(out)
    attn = jax.block_until_ready(attn)

    ref_out, ref_attn = _reference(q, k, v, temperature)
    assert out.shape == (nb, dv) and attn.shape == (nb, l)
    assert jnp.allclose(out, ref_out, atol=1e-5, rtol=1e-5)
    assert jnp.allclose(attn, ref_attn, atol=1e-5, rtol=1e-5)

    # Masked path with an explicit tile that does NOT divide NB (exercises the
    # ragged last block instead of wrapper-side padding).
    mask = jax.random.bernoulli(km, 0.3, (nb, l))
    mask = mask.at[:, 0].set(False)        # keep >= 1 valid position per row
    out_m, attn_m = matrix_vector_attention(q, k, v, temperature, mask=mask,
                                            block_b=32)
    out_m = jax.block_until_ready(out_m)
    attn_m = jax.block_until_ready(attn_m)

    ref_out_m, ref_attn_m = _reference(q, k, v, temperature, mask=mask)
    assert jnp.allclose(out_m, ref_out_m, atol=1e-5, rtol=1e-5)
    assert jnp.allclose(attn_m, ref_attn_m, atol=1e-5, rtol=1e-5)

    print("KERNEL_OK")
</pallas_src>

<mosaic_0001>
module attributes {stable_mosaic.version = 11 : i64} {
  func.func @_mvsdpa_kernel(%arg0: i32, %arg1: memref<24x32xf32, #tpu.memory_space<vmem>>, %arg2: memref<24x8x32xf32, #tpu.memory_space<vmem>>, %arg3: memref<24x8x32xf32, #tpu.memory_space<vmem>>, %arg4: memref<24x32xf32, #tpu.memory_space<vmem>>, %arg5: memref<24x8xf32, #tpu.memory_space<vmem>>) attributes {dimension_semantics = [#tpu.dimension_semantics<parallel>], iteration_bounds = array<i64: 2>, scalar_prefetch = 0 : i64, scratch_operands = 0 : i64, tpu.core_type = #tpu.core_type<tc>, window_params = [{transform_indices = @transform_0, window_bounds = array<i64: 24, 32>}, {transform_indices = @transform_1, window_bounds = array<i64: 24, 8, 32>}, {transform_indices = @transform_2, window_bounds = array<i64: 24, 8, 32>}, {transform_indices = @transform_3, window_bounds = array<i64: 24, 32>}, {transform_indices = @transform_4, window_bounds = array<i64: 24, 8>}]} {
    %c0 = arith.constant 0 : index
    %c0_0 = arith.constant 0 : index
    %0 = vector.load %arg1[%c0, %c0_0] : memref<24x32xf32, #tpu.memory_space<vmem>>, vector<24x32xf32>
    %c0_1 = arith.constant 0 : index
    %c0_2 = arith.constant 0 : index
    %c0_3 = arith.constant 0 : index
    %1 = vector.load %arg2[%c0_1, %c0_2, %c0_3] : memref<24x8x32xf32, #tpu.memory_space<vmem>>, vector<24x8x32xf32>
    %c0_4 = arith.constant 0 : index
    %c0_5 = arith.constant 0 : index
    %c0_6 = arith.constant 0 : index
    %2 = vector.load %arg3[%c0_4, %c0_5, %c0_6] : memref<24x8x32xf32, #tpu.memory_space<vmem>>, vector<24x8x32xf32>
    %3 = vector.shape_cast %0 : vector<24x32xf32> to vector<24x1x32xf32>
    %4 = vector.broadcast %3 : vector<24x1x32xf32> to vector<24x8x32xf32>
    %5 = arith.mulf %4, %1 : vector<24x8x32xf32>
    %cst = arith.constant dense<0.000000e+00> : vector<24x8xf32>
    %6 = vector.multi_reduction <add>, %5, %cst [2] : vector<24x8x32xf32> to vector<24x8xf32>
    %7 = vector.shape_cast %6 : vector<24x8xf32> to vector<24x8x1xf32>
    %cst_7 = arith.constant 0.176776692 : f32
    %8 = vector.broadcast %cst_7 : f32 to vector<24x8x1xf32>
    %9 = arith.mulf %7, %8 : vector<24x8x1xf32>
    %cst_8 = arith.constant dense<0xFF800000> : vector<24x1xf32>
    %10 = vector.multi_reduction <maximumf>, %9, %cst_8 [1] : vector<24x8x1xf32> to vector<24x1xf32>
    %11 = vector.shape_cast %10 : vector<24x1xf32> to vector<24x1x1xf32>
    %12 = vector.broadcast %11 : vector<24x1x1xf32> to vector<24x8x1xf32>
    %13 = arith.subf %9, %12 : vector<24x8x1xf32>
    %14 = math.exp %13 : vector<24x8x1xf32>
    %cst_9 = arith.constant dense<0.000000e+00> : vector<24x1xf32>
    %15 = vector.multi_reduction <add>, %14, %cst_9 [1] : vector<24x8x1xf32> to vector<24x1xf32>
    %16 = vector.shape_cast %15 : vector<24x1xf32> to vector<24x1x1xf32>
    %17 = vector.broadcast %16 : vector<24x1x1xf32> to vector<24x8x1xf32>
    %18 = arith.divf %14, %17 : vector<24x8x1xf32>
    %19 = vector.broadcast %18 : vector<24x8x1xf32> to vector<24x8x32xf32>
    %20 = arith.mulf %19, %2 : vector<24x8x32xf32>
    %cst_10 = arith.constant dense<0.000000e+00> : vector<24x32xf32>
    %21 = vector.multi_reduction <add>, %20, %cst_10 [1] : vector<24x8x32xf32> to vector<24x32xf32>
    %c0_11 = arith.constant 0 : index
    %c0_12 = arith.constant 0 : index
    %22 = vector.load %arg4[%c0_11, %c0_12] : memref<24x32xf32, #tpu.memory_space<vmem>>, vector<24x32xf32>
    tpu.vector_store %arg4[%c0_11, %c0_12], %21 {strides = array<i32>} : memref<24x32xf32, #tpu.memory_space<vmem>>, vector<24x32xf32>,
    %23 = vector.shape_cast %18 : vector<24x8x1xf32> to vector<24x8xf32>
    %c0_13 = arith.constant 0 : index
    %c0_14 = arith.constant 0 : index
    %24 = vector.load %arg5[%c0_13, %c0_14] : memref<24x8xf32, #tpu.memory_space<vmem>>, vector<24x8xf32>
    tpu.vector_store %arg5[%c0_13, %c0_14], %23 {strides = array<i32>} : memref<24x8xf32, #tpu.memory_space<vmem>>, vector<24x8xf32>,
    return
  }
  func.func @transform_0(%arg0: i32) -> (i32, i32) {
    %c0_i32 = arith.constant 0 : i32
    %c0_i32_0 = arith.constant 0 : i32
    return %arg0, %c0_i32 : i32, i32
  }
  func.func @transform_1(%arg0: i32) -> (i32, i32, i32) {
    %c0_i32 = arith.constant 0 : i32
    %c0_i32_0 = arith.constant 0 : i32
    %c0_i32_1 = arith.constant 0 : i32
    return %arg0, %c0_i32, %c0_i32_0 : i32, i32, i32
  }
  func.func @transform_2(%arg0: i32) -> (i32, i32, i32) {
    %c0_i32 = arith.constant 0 : i32
    %c0_i32_0 = arith.constant 0 : i32
    %c0_i32_1 = arith.constant 0 : i32
    return %arg0, %c0_i32, %c0_i32_0 : i32, i32, i32
  }
  func.func @transform_3(%arg0: i32) -> (i32, i32) {
    %c0_i32 = arith.constant 0 : i32
    %c0_i32_0 = arith.constant 0 : i32
    return %arg0, %c0_i32 : i32, i32
  }
  func.func @transform_4(%arg0: i32) -> (i32, i32) {
    %c0_i32 = arith.constant 0 : i32
    %c0_i32_0 = arith.constant 0 : i32
    return %arg0, %c0_i32 : i32, i32
  }
}

</mosaic_0001>

<bundles_post_ra>
// kernel: tpu_custom_call.1
= control target key start
LH: loop header
LB: loop body
LE: loop exit
PB: predicated region body
PF: predicated region fallthrough
CT: control target
= control target key end

     0   :  { %s1777_s15 = smov 0   ;;  %s2451_s0 = inlined_call_operand.vmem [shape: f32[48,32], index: 0, kind: input, shape index: {}]   ;;  %s2452_s1 = inlined_call_operand.vmem [shape: f32[48,8,32], index: 1, kind: input, shape index: {}]   ;;  %s2453_s2 = inlined_call_operand.vmem [shape: f32[48,8,32], index: 2, kind: input, shape index: {}]   ;;  %s2454_s3 = inlined_call_operand.vmem [shape: f32[48,32], index: 3, kind: output, shape index: {0}]   ;;  %s2455_s4 = inlined_call_operand.vmem [shape: f32[48,8], index: 4, kind: output, shape index: {1}]  }
   0x1 LB: > { %s1623_s16 = sadd.s32 4294967295, %s1749_s15   ;;  %p1627_p0 = scmp.ge.s32.totalorder %s1749_s15, 1  ;;  %s1749_s15 = sphi %s1777_s15, %s15_s15  }
   0x2   : > { %p188_p1 = scmp.lt.s32.totalorder %s1749_s15, 3 }
   0x4   : > { %p189_p2 = pnand %p1627_p0, %p188_p1 }
   0x5   : > { %s229_s17 = smul.u32 (!%p189_p2), 3, %s1623_s16  ;;  %v317_v0 = vlaneseq (!%p189_p2)  ;;  %v1751_v1 = vmov (!%p189_p2), 1966171168   ;;  %vm604_vm0 = vcmask (!%p189_p2), 261120   ;;  %vm1325_vm1 = vcmask (!%p189_p2), 1041409  }
   0x6   : > { %192 = sbr.rel (%p189_p2) target bundleno = 355 (0x163), region = 32  ;;  %v315_v2 = vunpack.c.l.s4 (!%p189_p2), %v1751_v1  ;;  %vm1327_vm2 = vcmask (!%p189_p2), 1042434   ;;  %vm1329_vm3 = vcmask (!%p189_p2), 1043459   ;;  %vm1331_vm4 = vcmask (!%p189_p2), 1044484  }
   0x7   : > { %s235_s18 = smul.u32 (!%p189_p2), 24, %s1623_s16  ;;  %p230_p3 = scmp.lt.s32.totalorder (!%p189_p2), %s229_s17, 5  ;;  %v318_v3 = vshrl.u32 (!%p189_p2), %v317_v0, 7  ;;  %v1384_v4 = vand.u32 (!%p189_p2), 127, %v317_v0  ;;  %vm1333_vm5 = vcmask (!%p189_p2), 1045509   ;;  %vm1335_vm6 = vcmask (!%p189_p2), 1046534  }
   0x8   : > { %v316_v5 = vunpack.c.0.s8 (!%p189_p2), %v315_v2  ;;  %vm1337_vm7 = vcmask (!%p189_p2), 1047559   ;;  %vm1505_vm8 = vcmask (!%p189_p2), 64512  }
   0x9   : > { %p236_p4 = scmp.lt.s32.totalorder (!%p189_p2), %s235_s18, 47  ;;  %v1785_v6 = vsub.s32 (!%p189_p2), %v1384_v4, %v318_v3  ;;  %v1808_v12 = vsub.s32 (!%p189_p2), 0, %v318_v3 }
   0xa   : > { %v1789_v7 = vsub.s32 (!%p189_p2), %v316_v5, %v318_v3 }
   0xd   : > { %s2457_s17 = smov (!%p230_p3, %s229_s17), 5  ;;  %s2459_s18 = smov (!%p236_p4, %s235_s18), 47 }
   0xe   : > { %s1791_s19 = sshll.u32 %s2457_s17, 3  ;;  %s1629_s23 = sshll.u32 %s2459_s18, 3 }
   0xf   : > { %s233_s22 = scalar_lea.vmem %s2451_s0, %s1791_s19  ;;  %s1805_s26 = scalar_lea.vmem %s2452_s1, %s1629_s23 }
  0x10   : > { %v260_v8 = vld [vmem:[%s233_s22 + $0x8] sm:$0xff]  ;;  %v259_v9 = vld [vmem:[%s233_s22] sm:$0xff]  ;;  %v1798_v10 = vld [vmem:[%s233_s22 + $0x10] sm:$0xff]  ;;  %s1994_s29 = scalar_lea.vmem %s2453_s2, %s1629_s23  ;;  %s2315_s6 = scalar_lea.vmem %s2455_s4, %s1791_s19 }
  0x11   : > { %v369_v11 = vrot.slane %v260_v8, %v1789_v7  ;;  %v320_v13 = vrot.slane %v259_v9, %v1789_v7  ;;  %v418_v14 = vrot.slane %v1798_v10, %v1789_v7  ;;  %v270_v19 = vld [vmem:[%s1805_s26 + $0x40] sm:$0xff]  ;;  %v271_v28 = vld [vmem:[%s1805_s26 + $0x48] sm:$0xff]  ;;  %v362_v38 = vcombine.high %v260_v8, %v260_v8  ;;  %v272_v52 = vld [vmem:[%s1805_s26 + $0x50] sm:$0xff]  ;;  %s2366_s9 = scalar_lea.vmem %s2454_s3, %s1791_s19 }
  0x12   : > { %v262_v20 = vld [vmem:[%s1805_s26] sm:$0xff]  ;;  %v263_v36 = vld [vmem:[%s1805_s26 + $0x8] sm:$0xff]  ;;  %v313_v44 = vcombine.high %v259_v9, %v259_v9  ;;  %v264_v55 = vld [vmem:[%s1805_s26 + $0x10] sm:$0xff]  ;;  %v411_v59 = vcombine.high %v1798_v10, %v1798_v10 }
  0x13   : > { %v385_v15 = vrot.slane %v369_v11, %v1789_v7  ;;  %v336_v16 = vrot.slane %v320_v13, %v1789_v7  ;;  %v377_v17 = vcombine.high %v369_v11, %v369_v11  ;;  %v328_v18 = vcombine.high %v320_v13, %v320_v13  ;;  %v278_v26 = vld [vmem:[%s1805_s26 + $0x80] sm:$0xff]  ;;  %v279_v40 = vld [vmem:[%s1805_s26 + $0x88] sm:$0xff]  ;;  %v280_v2 = vld [vmem:[%s1805_s26 + $0x90] sm:$0xff] }
  0x14   : > { %v434_v21 = vrot.slane %v418_v14, %v1789_v7  ;;  %v426_v22 = vcombine.high %v418_v14, %v418_v14  ;;  %v376_v57 = vrot.slane %v362_v38, %v1789_v7  ;;  %v327_v58 = vrot.slane %v313_v44, %v1789_v7  ;;  %v265_v3 = vld [vmem:[%s1805_s26 + $0x18] sm:$0xff] }
  0x15   : > { %v495_v23 = vrot.slane %v385_v15, %v1808_v12  ;;  %v463_v24 = vrot.slane %v336_v16, %v1808_v12  ;;  %v399_v25 = vrot.slane %v377_v17, %v1789_v7  ;;  %v350_v27 = vrot.slane %v328_v18, %v1789_v7  ;;  %v273_v13 = vld [vmem:[%s1805_s26 + $0x58] sm:$0xff] }
  0x16   : > { %v527_v29 = vrot.slane %v434_v21, %v1808_v12  ;;  %v448_v30 = vrot.slane %v426_v22, %v1789_v7  ;;  %v407_v31 = vcombine.high %v385_v15, %v385_v15  ;;  %v358_v32 = vcombine.high %v336_v16, %v336_v16 }
  0x17   : > { %v588_v33 = vmul.f32 %v495_v23, %v270_v19  ;;  %v580_v34 = vmul.f32 %v463_v24, %v262_v20  ;;  %v499_v35 = vrot.slane %v399_v25, %v1808_v12  ;;  %v467_v37 = vrot.slane %v350_v27, %v1808_v12  ;;  %v281_v19 = vld [vmem:[%s1805_s26 + $0x98] sm:$0xff] }
  0x18   : > { %v596_v39 = vmul.f32 %v527_v29, %v278_v26  ;;  %v531_v41 = vrot.slane %v448_v30, %v1808_v12  ;;  %v503_v48 = vrot.slane %v407_v31, %v1808_v12  ;;  %v471_v49 = vrot.slane %v358_v32, %v1808_v12 }
  0x19   : > { %v629_v42 = vsel %vm604_vm0, %v588_v33, 0.0  ;;  %v605_v43 = vsel %vm604_vm0, %v580_v34, 0.0  ;;  %v589_v45 = vmul.f32 %v499_v35, %v271_v28  ;;  %v581_v47 = vmul.f32 %v467_v37, %v263_v36  ;;  %v266_v28 = vld [vmem:[%s1805_s26 + $0x20] sm:$0xff] }
  0x1a   : > { %630 = vadd.xlane.f32.xlu1 %v629_v42  ;;  %606 = vadd.xlane.f32.xlu0 %v605_v43  ;;  %v653_v46 = vsel %vm604_vm0, %v596_v39, 0.0  ;;  %v597_v51 = vmul.f32 %v531_v41, %v279_v40  ;;  %v456_v53 = vcombine.high %v434_v21, %v434_v21  ;;  %v360_v54 = vcombine.high %v350_v27, %v350_v27  ;;  %v274_v27 = vld [vmem:[%s1805_s26 + $0x60] sm:$0xff]  ;;  %v267_v41 = vld [vmem:[%s1805_s26 + $0x28] sm:$0xff] }
  0x1b   : > { %v632_v50 = vsel %vm604_vm0, %v589_v45, 0.0  ;;  %v409_v56 = vcombine.high %v399_v25, %v399_v25  ;;  %v590_v60 = vmul.f32 %v503_v48, %v272_v52  ;;  %v608_v0 = vsel %vm604_vm0, %v581_v47, 0.0  ;;  %v282_v37 = vld [vmem:[%s1805_s26 + $0xa0] sm:$0xff] }
  0x1c   : > { %v535_v61 = vrot.slane %v456_v53, %v1808_v12  ;;  %v475_v62 = vrot.slane %v360_v54, %v1808_v12  ;;  %v656_v63 = vsel %vm604_vm0, %v597_v51, 0.0  ;;  %v582_v1 = vmul.f32 %v471_v49, %v264_v55  ;;  %v283_v51 = vld [vmem:[%s1805_s26 + $0xa8] sm:$0xff] }
  0x1d   : > { %v458_v4 = vcombine.high %v448_v30, %v448_v30  ;;  %v507_v5 = vrot.slane %v409_v56, %v1808_v12  ;;  %v392_v8 = vrot.slane %v376_v57, %v1789_v7  ;;  %v343_v9 = vrot.slane %v327_v58, %v1789_v7 }
  0x1e   : > { %633 = vadd.xlane.f32.xlu1 %v632_v50  ;;  %654 = vadd.xlane.f32.xlu0 %v653_v46  ;;  %v598_v10 = vmul.f32 %v535_v61, %v280_v2  ;;  %v583_v11 = vmul.f32 %v475_v62, %v265_v3  ;;  %v425_v14 = vrot.slane %v411_v59, %v1789_v7  ;;  %v635_v15 = vsel %vm604_vm0, %v590_v60, 0.0  ;;  %v275_v50 = vld [vmem:[%s1805_s26 + $0x68] sm:$0xff]  ;;  %v276_v60 = vld [vmem:[%s1805_s26 + $0x70] sm:$0xff] }
  0x1f   : > { %v611_v16 = vsel %vm604_vm0, %v582_v1, 0.0  ;;  %v539_v17 = vrot.slane %v458_v4, %v1808_v12  ;;  %v329_v18 = vcombine.high %v327_v58, %v327_v58  ;;  %v591_v20 = vmul.f32 %v507_v5, %v273_v13  ;;  %v268_v58 = vld [vmem:[%s1805_s26 + $0x30] sm:$0xff] }
  0x20   : > { %v511_v21 = vrot.slane %v392_v8, %v1808_v12  ;;  %v659_v22 = vsel %vm604_vm0, %v598_v10, 0.0  ;;  %v614_v23 = vsel %vm604_vm0, %v583_v11, 0.0  ;;  %v479_v24 = vrot.slane %v343_v9, %v1808_v12  ;;  %v284_v4 = vld [vmem:[%s1805_s26 + $0xb0] sm:$0xff] }
  0x21   : > { %v441_v25 = vrot.slane %v425_v14, %v1789_v7  ;;  %v599_v26 = vmul.f32 %v539_v17, %v281_v19  ;;  %v357_v29 = vrot.slane %v329_v18, %v1789_v7  ;;  %v378_v30 = vcombine.high %v376_v57, %v376_v57  ;;  %v285_v17 = vld [vmem:[%s1805_s26 + $0xb8] sm:$0xff] }
  0x22   : > { %657 = vadd.xlane.f32.xlu1 %v656_v63  ;;  %609 = vadd.xlane.f32.xlu0 %v608_v0  ;;  %v427_v31 = vcombine.high %v425_v14, %v425_v14  ;;  %v638_v32 = vsel %vm604_vm0, %v591_v20, 0.0  ;;  %v592_v33 = vmul.f32 %v511_v21, %v274_v27  ;;  %v584_v34 = vmul.f32 %v479_v24, %v266_v28 }
  0x23   : > { %v543_v35 = vrot.slane %v441_v25, %v1808_v12  ;;  %v662_v36 = vsel %vm604_vm0, %v599_v26, 0.0  ;;  %v483_v38 = vrot.slane %v357_v29, %v1808_v12  ;;  %v406_v39 = vrot.slane %v378_v30, %v1789_v7 }
  0x24   : > { %v455_v40 = vrot.slane %v427_v31, %v1789_v7  ;;  %v641_v42 = vsel %vm604_vm0, %v592_v33, 0.0  ;;  %v617_v43 = vsel %vm604_vm0, %v584_v34, 0.0  ;;  %v359_v45 = vcombine.high %v343_v9, %v343_v9 }
  0x25   : > { %v600_v44 = vmul.f32 %v543_v35, %v282_v37  ;;  %v585_v46 = vmul.f32 %v483_v38, %v267_v41  ;;  %v515_v47 = vrot.slane %v406_v39, %v1808_v12  ;;  %v408_v49 = vcombine.high %v392_v8, %v392_v8  ;;  %v269_v8 = vld [vmem:[%s1805_s26 + $0x38] sm:$0xff] }
  0x26   : > { %636 = vadd.xlane.f32.xlu1 %v635_v15  ;;  %612 = vadd.xlane.f32.xlu0 %v611_v16  ;;  %v547_v48 = vrot.slane %v455_v40, %v1808_v12  ;;  %v457_v7 = vcombine.high %v441_v25, %v441_v25  ;;  %v487_v53 = vrot.slane %v359_v45, %v1808_v12  ;;  %v277_v16 = vld [vmem:[%s1805_s26 + $0x78] sm:$0xff] }
  0x27   : > { %v665_v52 = vsel %vm604_vm0, %v600_v44, 0.0  ;;  %v361_v54 = vcombine.high %v357_v29, %v357_v29  ;;  %v620_v55 = vsel %vm604_vm0, %v585_v46, 0.0  ;;  %v593_v56 = vmul.f32 %v515_v47, %v275_v50 }
  0x28   : > { %v601_v57 = vmul.f32 %v547_v48, %v283_v51  ;;  %v519_v59 = vrot.slane %v408_v49, %v1808_v12  ;;  %v551_v61 = vrot.slane %v457_v7, %v1808_v12  ;;  %v586_v62 = vmul.f32 %v487_v53, %v268_v58 }
  0x29   : > { %v491_v63 = vrot.slane %v361_v54, %v1808_v12  ;;  %v410_v0 = vcombine.high %v406_v39, %v406_v39  ;;  %v644_v1 = vsel %vm604_vm0, %v593_v56, 0.0  ;;  %v459_v5 = vcombine.high %v455_v40, %v455_v40 }
  0x2a   : > { %660 = vadd.xlane.f32.xlu0 %v659_v22  ;;  %615 = vadd.xlane.f32.xlu1 %v614_v23  ;;  %v668_v2 = vsel %vm604_vm0, %v601_v57, 0.0  ;;  %v594_v3 = vmul.f32 %v519_v59, %v276_v60  ;;  %v623_v9 = vsel %vm604_vm0, %v586_v62, 0.0  ;;  %v602_v10 = vmul.f32 %v551_v61, %v284_v4 }
  0x2b   : > { %v587_v13 = vmul.f32 %v491_v63, %v269_v8  ;;  %v523_v14 = vrot.slane %v410_v0, %v1808_v12  ;;  %v555_v15 = vrot.slane %v459_v5, %v1808_v12 }
  0x2c   : > { %v647_v11 = vsel %vm604_vm0, %v594_v3, 0.0  ;;  %v671_v18 = vsel %vm604_vm0, %v602_v10, 0.0 }
  0x2d   : > { %v626_v19 = vsel %vm604_vm0, %v587_v13, 0.0  ;;  %v595_v20 = vmul.f32 %v523_v14, %v277_v16  ;;  %v603_v21 = vmul.f32 %v555_v15, %v285_v17 }
  0x2e   : > { %639 = vadd.xlane.f32.xlu0 %v638_v32  ;;  %663 = vadd.xlane.f32.xlu1 %v662_v36 }
  0x2f   : > { %v650_v22 = vsel %vm604_vm0, %v595_v20, 0.0  ;;  %v674_v23 = vsel %vm604_vm0, %v603_v21, 0.0 }
  0x32   : > { %642 = vadd.xlane.f32.xlu1 %v641_v42  ;;  %618 = vadd.xlane.f32.xlu0 %v617_v43 }
  0x36   : > { %666 = vadd.xlane.f32.xlu0 %v665_v52  ;;  %621 = vadd.xlane.f32.xlu1 %v620_v55 }
  0x3a   : > { %645 = vadd.xlane.f32.xlu0 %v644_v1  ;;  %669 = vadd.xlane.f32.xlu1 %v668_v2 }
  0x3e   : > { %624 = vadd.xlane.f32.xlu0 %v623_v9  ;;  %648 = vadd.xlane.f32.xlu1 %v647_v11 }
  0x42   : > { %672 = vadd.xlane.f32.xlu0 %v671_v18  ;;  %627 = vadd.xlane.f32.xlu1 %v626_v19 }
  0x46   : > { %651 = vadd.xlane.f32.xlu0 %v650_v22  ;;  %675 = vadd.xlane.f32.xlu1 %v674_v23 }
  0xa7   : > { %v631_v24 = vpop.xlane.xlu1 %630  ;;  %v607_v12 = vpop.xlane.xlu0 %606 }
  0xa8   : > { %v685_v25 = vmul.f32 0.17677669, %v631_v24  ;;  %v677_v26 = vmul.f32 0.17677669, %v607_v12 }
  0xaa   : > { %v749_v27 = vrot.slane %v685_v25, 4  ;;  %v701_v28 = vrot.slane %v677_v26, 4 }
  0xab   : > { %v634_v29 = vpop.xlane.xlu1 %633  ;;  %v655_v30 = vpop.xlane.xlu0 %654 }
  0xac   : > { %v750_v31 = vmax.f32 %v685_v25, %v749_v27  ;;  %v686_v32 = vmul.f32 0.17677669, %v634_v29  ;;  %v1902_v33 = vmul.f32 0.17677669, %v655_v30  ;;  %v702_v34 = vmax.f32 %v677_v26, %v701_v28 }
  0xae   : > { %v751_v35 = vrot.slane %v750_v31, 2  ;;  %v755_v36 = vrot.slane %v686_v32, 4  ;;  %v797_v38 = vrot.slane %v1902_v33, 4  ;;  %v703_v39 = vrot.slane %v702_v34, 2 }
  0xaf   : > { %v658_v37 = vpop.xlane.xlu1 %657  ;;  %v610_v40 = vpop.xlane.xlu0 %609 }
  0xb0   : > { %v752_v41 = vmax.f32 %v750_v31, %v751_v35  ;;  %v756_v42 = vmax.f32 %v686_v32, %v755_v36  ;;  %v798_v43 = vmax.f32 %v1902_v33, %v797_v38  ;;  %v1906_v44 = vmul.f32 0.17677669, %v658_v37 }
  0xb1   : > { %v704_v45 = vmax.f32 %v702_v34, %v703_v39  ;;  %v1908_v46 = vmul.f32 0.17677669, %v610_v40 }
  0xb2   : > { %v753_v48 = vrot.slane %v752_v41, 1  ;;  %v757_v49 = vrot.slane %v756_v42, 2  ;;  %v799_v51 = vrot.slane %v798_v43, 2  ;;  %v803_v7 = vrot.slane %v1906_v44, 4 }
  0xb3   : > { %v637_v47 = vpop.xlane.xlu1 %636  ;;  %v613_v50 = vpop.xlane.xlu0 %612  ;;  %v705_v53 = vrot.slane %v704_v45, 1  ;;  %v707_v54 = vrot.slane %v1908_v46, 4 }
  0xb4   : > { %v1911_v52 = vmul.f32 0.17677669, %v637_v47  ;;  %v754_v55 = vmax.f32 %v752_v41, %v753_v48  ;;  %v758_v56 = vmax.f32 %v756_v42, %v757_v49  ;;  %v1914_v57 = vmul.f32 0.17677669, %v613_v50 }
  0xb5   : > { %v800_v58 = vmax.f32 %v798_v43, %v799_v51  ;;  %v804_v59 = vmax.f32 %v1906_v44, %v803_v7  ;;  %v706_v61 = vmax.f32 %v704_v45, %v705_v53  ;;  %v708_v62 = vmax.f32 %v1908_v46, %v707_v54 }
  0xb6   : > { %v761_v60 = vrot.slane %v1911_v52, 4  ;;  %v853_v63 = vsub.f32 %v685_v25, %v754_v55  ;;  %v759_v0 = vrot.slane %v758_v56, 1  ;;  %v713_v1 = vrot.slane %v1914_v57, 4 }
  0xb7   : > { %v661_v2 = vpop.xlane.xlu0 %660  ;;  %v801_v3 = vrot.slane %v800_v58, 1  ;;  %v805_v4 = vrot.slane %v804_v59, 2  ;;  %v845_v8 = vsub.f32 %v677_v26, %v706_v61  ;;  %v709_v9 = vrot.slane %v708_v62, 2  ;;  %v616_v23 = vpop.xlane.xlu1 %615 }
  0xb8   : > { %v762_v5 = vmax.f32 %v1911_v52, %v761_v60  ;;  %v1921_v10 = vmul.f32 0.17677669, %v661_v2  ;;  %v885_v11 = vmul.f32 1.442695, %v853_v63  ;;  %v760_v13 = vmax.f32 %v758_v56, %v759_v0 }
  0xb9   : > { %v714_v14 = vmax.f32 %v1914_v57, %v713_v1  ;;  %v802_v15 = vmax.f32 %v800_v58, %v801_v3  ;;  %v806_v16 = vmax.f32 %v804_v59, %v805_v4  ;;  %v869_v18 = vmul.f32 1.442695, %v845_v8 }
  0xba   : > { %v763_v17 = vrot.slane %v762_v5, 2  ;;  %v710_v19 = vmax.f32 %v708_v62, %v709_v9  ;;  %v809_v20 = vrot.slane %v1921_v10, 4  ;;  %1647 = vpow2.f32 %v885_v11 }
  0xbb   : > { %v854_v21 = vsub.f32 %v686_v32, %v760_v13  ;;  %v715_v22 = vrot.slane %v714_v14, 2  ;;  %v861_v24 = vsub.f32 %v1902_v33, %v802_v15  ;;  %v807_v12 = vrot.slane %v806_v16, 1  ;;  %v640_v38 = vpop.xlane.xlu0 %639  ;;  %v664_v56 = vpop.xlane.xlu1 %663 }
  0xbc   : > { %v764_v25 = vmax.f32 %v762_v5, %v763_v17  ;;  %1649 = vpow2.f32 %v869_v18  ;;  %v711_v26 = vrot.slane %v710_v19, 1  ;;  %v810_v27 = vmax.f32 %v1921_v10, %v809_v20 }
  0xbd   : > { %v1927_v28 = vmul.f32 0.17677669, %v616_v23  ;;  %v887_v29 = vmul.f32 1.442695, %v854_v21  ;;  %v716_v30 = vmax.f32 %v714_v14, %v715_v22  ;;  %v808_v31 = vmax.f32 %v806_v16, %v807_v12 }
  0xbe   : > { %v765_v34 = vrot.slane %v764_v25, 1  ;;  %v901_v35 = vmul.f32 1.442695, %v861_v24  ;;  %v712_v36 = vmax.f32 %v710_v19, %v711_v26  ;;  %v811_v37 = vrot.slane %v810_v27, 2 }
  0xbf   : > { %v719_v32 = vrot.slane %v1927_v28, 4  ;;  %1651 = vpow2.f32 %v887_v29  ;;  %v717_v33 = vrot.slane %v716_v30, 1  ;;  %v862_v40 = vsub.f32 %v1906_v44, %v808_v31 }
  0xc0   : > { %v766_v41 = vmax.f32 %v764_v25, %v765_v34  ;;  %v1933_v42 = vmul.f32 0.17677669, %v640_v38  ;;  %1653 = vpow2.f32 %v901_v35  ;;  %v846_v43 = vsub.f32 %v1908_v46, %v712_v36 }
  0xc1   : > { %v812_v45 = vmax.f32 %v810_v27, %v811_v37  ;;  %v720_v47 = vmax.f32 %v1927_v28, %v719_v32  ;;  %v718_v48 = vmax.f32 %v716_v30, %v717_v33  ;;  %v903_v51 = vmul.f32 1.442695, %v862_v40  ;;  %v619_v32 = vpop.xlane.xlu0 %618 }
  0xc2   : > { %v855_v7 = vsub.f32 %v1911_v52, %v766_v41  ;;  %v767_v53 = vrot.slane %v1933_v42, 4  ;;  %v871_v44 = vmul.f32 1.442695, %v846_v43  ;;  %v1948_v63 = vmul.f32 0.17677669, %v664_v56 }
  0xc3   : > { %v813_v54 = vrot.slane %v812_v45, 1  ;;  %v721_v55 = vrot.slane %v720_v47, 2  ;;  %v847_v46 = vsub.f32 %v1914_v57, %v718_v48  ;;  %1655 = vpow2.f32 %v903_v51 }
  0xc4   : > { %v1930_v39 = vpop.eup %1647  ;;  %v889_v61 = vmul.f32 1.442695, %v855_v7  ;;  %v768_v62 = vmax.f32 %v1933_v42, %v767_v53  ;;  %1657 = vpow2.f32 %v871_v44  ;;  %v815_v8 = vrot.slane %v1948_v63, 4 }
  0xc5   : > { %v965_v50 = vrot.slane %v1930_v39, 4  ;;  %v814_v52 = vmax.f32 %v812_v45, %v813_v54  ;;  %v722_v0 = vmax.f32 %v720_v47, %v721_v55  ;;  %v873_v2 = vmul.f32 1.442695, %v847_v46  ;;  %v643_v54 = vpop.xlane.xlu1 %642 }
  0xc6   : > { %v1937_v49 = vpop.eup %1649  ;;  %1659 = vpow2.f32 %v889_v61  ;;  %v769_v5 = vrot.slane %v768_v62, 2  ;;  %v816_v18 = vmax.f32 %v1948_v63, %v815_v8 }
  0xc7   : > { %v917_v58 = vrot.slane %v1937_v49, 4  ;;  %v966_v59 = vadd.f32 %v1930_v39, %v965_v50  ;;  %v863_v9 = vsub.f32 %v1921_v10, %v814_v52  ;;  %v723_v11 = vrot.slane %v722_v0, 1 }
  0xc8   : > { %1661 = vpow2.f32 %v873_v2  ;;  %v770_v17 = vmax.f32 %v768_v62, %v769_v5  ;;  %v817_v26 = vrot.slane %v816_v18, 2  ;;  %v1974_v50 = vmul.f32 0.17677669, %v619_v32 }
  0xc9   : > { %v1945_v60 = vpop.eup %1651  ;;  %v918_v1 = vadd.f32 %v1937_v49, %v917_v58  ;;  %v967_v4 = vrot.slane %v966_v59, 2  ;;  %v905_v19 = vmul.f32 1.442695, %v863_v9  ;;  %v724_v20 = vmax.f32 %v722_v0, %v723_v11 }
  0xca   : > { %v1951_v3 = vpop.eup %1653  ;;  %v971_v57 = vrot.slane %v1945_v60, 4  ;;  %v771_v25 = vrot.slane %v770_v17, 1  ;;  %v818_v40 = vmax.f32 %v816_v18, %v817_v26  ;;  %v1983_v0 = vmul.f32 0.17677669, %v643_v54 }
  0xcb   : > { %v919_v13 = vrot.slane %v918_v1, 2  ;;  %v1013_v14 = vrot.slane %v1951_v3, 4  ;;  %v968_v15 = vadd.f32 %v967_v4, %v966_v59  ;;  %1663 = vpow2.f32 %v905_v19 }
  0xcc   : > { %v972_v16 = vadd.f32 %v1945_v60, %v971_v57  ;;  %v848_v29 = vsub.f32 %v1927_v28, %v724_v20  ;;  %v772_v33 = vmax.f32 %v770_v17, %v771_v25  ;;  %v819_v44 = vrot.slane %v818_v40, 1 }
  0xcd   : > { %v1959_v21 = vpop.eup %1655  ;;  %v920_v22 = vadd.f32 %v919_v13, %v918_v1  ;;  %v1014_v23 = vadd.f32 %v1951_v3, %v1013_v14  ;;  %v969_v10 = vrot.slane %v968_v15, 1  ;;  %v725_v59 = vrot.slane %v1974_v50, 4 }
  0xce   : > { %v1962_v24 = vpop.eup %1657  ;;  %v973_v12 = vrot.slane %v972_v16, 2  ;;  %v1019_v27 = vrot.slane %v1959_v21, 4  ;;  %v875_v45 = vmul.f32 1.442695, %v848_v29  ;;  %v856_v53 = vsub.f32 %v1933_v42, %v772_v33 }
  0xcf   : > { %v921_v31 = vrot.slane %v920_v22, 1  ;;  %v1015_v34 = vrot.slane %v1014_v23, 2  ;;  %v923_v35 = vrot.slane %v1962_v24, 4  ;;  %v970_v36 = vadd.f32 %v969_v10, %v968_v15 }
  0xd0   : > { %v1966_v30 = vpop.eup %1659  ;;  %v974_v37 = vadd.f32 %v973_v12, %v972_v16  ;;  %v1020_v41 = vadd.f32 %v1959_v21, %v1019_v27  ;;  %v891_v1 = vmul.f32 1.442695, %v856_v53  ;;  %v820_v42 = vmax.f32 %v818_v40, %v819_v44  ;;  %v294_v27 = vld [vmem:[%s1994_s29 + $0x40] sm:$0xff] }
  0xd1   : > { %v977_v43 = vrot.slane %v1966_v30, 4  ;;  %v922_v47 = vadd.f32 %v921_v31, %v920_v22  ;;  %v1016_v28 = vadd.f32 %v1015_v34, %v1014_v23  ;;  %v924_v48 = vadd.f32 %v1962_v24, %v923_v35  ;;  %v667_v22 = vpop.xlane.xlu0 %666 }
  0xd2   : > { %v1969_v38 = vpop.eup %1661  ;;  %1665 = vrcp.f32 %v970_v36  ;;  %v975_v51 = vrot.slane %v974_v37, 1  ;;  %v1021_v55 = vrot.slane %v1020_v41, 2  ;;  %v726_v9 = vmax.f32 %v1974_v50, %v725_v59 }
  0xd3   : > { %v929_v7 = vrot.slane %v1969_v38, 4  ;;  %v978_v56 = vadd.f32 %v1966_v30, %v977_v43  ;;  %1667 = vpow2.f32 %v875_v45  ;;  %v1017_v58 = vrot.slane %v1016_v28, 1  ;;  %v286_v45 = vld [vmem:[%s1994_s29] sm:$0xff] }
  0xd4   : > { %1669 = vrcp.f32 %v922_v47  ;;  %v925_v46 = vrot.slane %v924_v48, 2  ;;  %v976_v62 = vadd.f32 %v975_v51, %v974_v37  ;;  %v1022_v2 = vadd.f32 %v1021_v55, %v1020_v41  ;;  %v622_v41 = vpop.xlane.xlu1 %621 }
  0xd5   : > { %v1980_v61 = vpop.eup %1663  ;;  %v930_v52 = vadd.f32 %v1969_v38, %v929_v7  ;;  %v979_v4 = vrot.slane %v978_v56, 2  ;;  %v1018_v57 = vadd.f32 %v1017_v58, %v1016_v28  ;;  %v773_v13 = vrot.slane %v1983_v0, 4 }
  0xd6   : > { %v926_v5 = vadd.f32 %v925_v46, %v924_v48  ;;  %v1025_v8 = vrot.slane %v1980_v61, 4  ;;  %1671 = vrcp.f32 %v976_v62  ;;  %v864_v14 = vsub.f32 %v1948_v63, %v820_v42  ;;  %v295_v42 = vld [vmem:[%s1994_s29 + $0x48] sm:$0xff] }
  0xd7   : > { %v931_v11 = vrot.slane %v930_v52, 2  ;;  %1673 = vpow2.f32 %v891_v1  ;;  %v1023_v16 = vrot.slane %v1022_v2, 1  ;;  %v980_v17 = vadd.f32 %v979_v4, %v978_v56 }
  0xd8   : > { %1675 = vrcp.f32 %v1018_v57  ;;  %v927_v18 = vrot.slane %v926_v5, 1  ;;  %v1026_v19 = vadd.f32 %v1980_v61, %v1025_v8  ;;  %v727_v20 = vrot.slane %v726_v9, 2  ;;  %v670_v57 = vpop.xlane.xlu1 %669 }
  0xd9   : > { %v932_v10 = vadd.f32 %v931_v11, %v930_v52  ;;  %v774_v63 = vmax.f32 %v1983_v0, %v773_v13  ;;  %v907_v26 = vmul.f32 1.442695, %v864_v14  ;;  %v1024_v29 = vadd.f32 %v1023_v16, %v1022_v2 }
  0xda   : > { %v981_v31 = vrot.slane %v980_v17, 1  ;;  %v928_v34 = vadd.f32 %v927_v18, %v926_v5  ;;  %v1027_v35 = vrot.slane %v1026_v19, 2  ;;  %v728_v37 = vmax.f32 %v726_v9, %v727_v20  ;;  %v302_v18 = vld [vmem:[%s1994_s29 + $0x80] sm:$0xff] }
  0xdb   : > { %v933_v33 = vrot.slane %v932_v10, 1  ;;  %v775_v40 = vrot.slane %v774_v63, 2  ;;  %1677 = vpow2.f32 %v907_v26  ;;  %v2010_v48 = vmul.f32 0.17677669, %v667_v22 }
  0xdc   : > { %v1666_v15 = vpop.eup %1665  ;;  %1679 = vrcp.f32 %v1024_v29  ;;  %v982_v28 = vadd.f32 %v981_v31, %v980_v17  ;;  %v1028_v7 = vadd.f32 %v1027_v35, %v1026_v19  ;;  %v729_v53 = vrot.slane %v728_v37, 1 }
  0xdd   : > { %v1997_v23 = vpop.eup %1667  ;;  %v2001_v25 = vmul.f32 %v1666_v15, %v1930_v39  ;;  %v646_v39 = vpop.xlane.xlu0 %645  ;;  %1681 = vrcp.f32 %v928_v34  ;;  %v934_v54 = vadd.f32 %v933_v33, %v932_v10  ;;  %v2016_v55 = vmax.f32 %v774_v63, %v775_v40 }
  0xde   : > { %v1670_v12 = vpop.eup %1669  ;;  %v935_v36 = vrot.slane %v1997_v23, 4  ;;  %v2018_v56 = vmul.f32 0.17677669, %v622_v41  ;;  %v730_v62 = vmax.f32 %v728_v37, %v729_v53  ;;  %v2024_v52 = vmul.f32 0.17677669, %v646_v39 }
  0xdf   : > { %v2006_v32 = vmul.f32 %v1670_v12, %v1937_v49  ;;  %v1117_v43 = vmul.f32 %v2001_v25, %v294_v27  ;;  %v1420_v1 = vrot.slane %v2001_v25, %v1785_v6  ;;  %1683 = vrcp.f32 %v982_v28  ;;  %v287_v25 = vld [vmem:[%s1994_s29 + $0x8] sm:$0xff] }
  0xe0   : > { %v1672_v47 = vpop.eup %1671  ;;  %v936_v49 = vadd.f32 %v1997_v23, %v935_v36  ;;  %v731_v4 = vrot.slane %v2018_v56, 4  ;;  %v1029_v5 = vrot.slane %v1028_v7, 1  ;;  %v849_v9 = vsub.f32 %v1974_v50, %v730_v62 }
  0xe1   : > { %v2012_v51 = vpop.eup %1673  ;;  %v1109_v44 = vmul.f32 %v2006_v32, %v286_v45  ;;  %v1189_v46 = vsel %vm604_vm0, %v1117_v43, 0.0  ;;  %v2022_v59 = vmul.f32 %v1672_v47, %v1945_v60  ;;  %v779_v60 = vrot.slane %v2024_v52, 4  ;;  %v625_v11 = vpop.xlane.xlu0 %624 }
  0xe2   : > { %v1676_v58 = vpop.eup %1675  ;;  %v983_v2 = vrot.slane %v2012_v51, 4  ;;  %v937_v8 = vrot.slane %v936_v49, 2  ;;  %v1190_v13 = vrot.slane %v1189_v46, 4  ;;  %v732_v16 = vmax.f32 %v2018_v56, %v731_v4 }
  0xe3   : > { %v1133_v14 = vsel %vm604_vm0, %v1109_v44, 0.0  ;;  %v2035_v15 = vmul.f32 %v1676_v58, %v1951_v3  ;;  %v1118_v17 = vmul.f32 %v2022_v59, %v295_v42  ;;  %v821_v19 = vrot.slane %v2010_v48, 4 }
  0xe4   : > { %v780_v20 = vmax.f32 %v2024_v52, %v779_v60  ;;  %v2042_v50 = vmul.f32 0.17677669, %v670_v57  ;;  %v1388_v22 = vrot.slane %v2006_v32, %v1785_v6  ;;  %v877_v10 = vmul.f32 1.442695, %v849_v9 }
  0xe5   : > { %v733_v63 = vrot.slane %v732_v16, 2  ;;  %v2046_v12 = vmul.f32 0.17677669, %v625_v11  ;;  %v2048_v3 = vpop.eup %1677  ;;  %v1134_v26 = vrot.slane %v1133_v14, 4  ;;  %1685 = vrcp.f32 %v934_v54 }
  0xe6   : > { %v1030_v27 = vadd.f32 %v1029_v5, %v1028_v7  ;;  %v781_v29 = vrot.slane %v780_v20, 2  ;;  %v1680_v31 = vpop.eup %1679  ;;  %v1125_v34 = vmul.f32 %v2035_v15, %v302_v18  ;;  %v938_v35 = vadd.f32 %v937_v8, %v936_v49 }
  0xe7   : > { %v734_v36 = vmax.f32 %v732_v16, %v733_v63  ;;  %v737_v37 = vrot.slane %v2046_v12, 4  ;;  %v1682_v33 = vpop.eup %1681  ;;  %v1191_v40 = vadd.f32 %v1190_v13, %v1189_v46  ;;  %v1196_v41 = vsel %vm604_vm0, %v1118_v17, 0.0  ;;  %v303_v16 = vld [vmem:[%s1994_s29 + $0x88] sm:$0xff] }
  0xe8   : > { %v822_v43 = vmax.f32 %v2010_v48, %v821_v19  ;;  %v827_v45 = vrot.slane %v2042_v50, 4  ;;  %1687 = vpow2.f32 %v877_v10  ;;  %v782_v47 = vmax.f32 %v780_v20, %v781_v29 }
  0xe9   : > { %v735_v39 = vrot.slane %v734_v36, 1  ;;  %v738_v28 = vmax.f32 %v2046_v12, %v737_v37  ;;  %v1135_v7 = vadd.f32 %v1134_v26, %v1133_v14  ;;  %v1424_v49 = vrot.slane %v2022_v59, %v1785_v6  ;;  %v2063_v54 = vpop.eup %1683  ;;  %v649_v59 = vpop.xlane.xlu1 %648 }
  0xea   : > { %v1452_v53 = vrot.slane %v2035_v15, %v1785_v6  ;;  %v2061_v44 = vadd.f32 %v2012_v51, %v983_v2  ;;  %v1245_v58 = vsel %vm604_vm0, %v1125_v34, 0.0  ;;  %1689 = vrcp.f32 %v1030_v27 }
  0xeb   : > { %v939_v46 = vrot.slane %v938_v35, 1  ;;  %v736_v62 = vmax.f32 %v734_v36, %v735_v39  ;;  %v1192_v42 = vrot.slane %v1191_v40, 2  ;;  %v1197_v4 = vrot.slane %v1196_v41, 4 }
  0xec   : > { %v777_v57 = vrot.slane %v2016_v55, 1  ;;  %v823_v5 = vrot.slane %v822_v43, 2  ;;  %v783_v9 = vrot.slane %v782_v47, 1  ;;  %v828_v2 = vmax.f32 %v2042_v50, %v827_v45 }
  0xed   : > { %v850_v8 = vsub.f32 %v2018_v56, %v736_v62  ;;  %v739_v60 = vrot.slane %v738_v28, 2  ;;  %v1136_v11 = vrot.slane %v1135_v7, 2  ;;  %v2073_v13 = vsel %vm1325_vm1, %v1424_v49, %v1420_v1 }
  0xee   : > { %v1246_v14 = vrot.slane %v1245_v58, 4  ;;  %v1096_v15 = vmul.f32 %v1680_v31, %v1959_v21  ;;  %v2078_v17 = vmul.f32 %v1682_v33, %v1962_v24  ;;  %v2080_v56 = vadd.f32 %v939_v46, %v938_v35  ;;  %v673_v24 = vpop.xlane.xlu0 %672 }
  0xef   : > { %v879_v18 = vmul.f32 1.442695, %v850_v8  ;;  %v2082_v19 = vmul.f32 0.17677669, %v649_v59  ;;  %v2084_v20 = vpop.eup %1685  ;;  %v1193_v10 = vadd.f32 %v1192_v42, %v1191_v40  ;;  %v2086_v63 = vadd.f32 %v1197_v4, %v1196_v41  ;;  %v628_v8 = vpop.xlane.xlu1 %627 }
  0xf0   : > { %v778_v1 = vmax.f32 %v2016_v55, %v777_v57  ;;  %v824_v26 = vmax.f32 %v822_v43, %v823_v5  ;;  %v784_v21 = vmax.f32 %v782_v47, %v783_v9  ;;  %v829_v27 = vrot.slane %v828_v2, 2 }
  0xf1   : > { %1691 = vpow2.f32 %v879_v18  ;;  %v740_v29 = vmax.f32 %v738_v28, %v739_v60  ;;  %v2090_v31 = vadd.f32 %v1136_v11, %v1135_v7  ;;  %v1247_v34 = vadd.f32 %v1246_v14, %v1245_v58 }
  0xf2   : > { %v1126_v35 = vmul.f32 %v1096_v15, %v303_v16  ;;  %v1456_v36 = vrot.slane %v1096_v15, %v1785_v6  ;;  %v2093_v37 = vpop.eup %1687  ;;  %v1110_v33 = vmul.f32 %v2078_v17, %v287_v25  ;;  %v1392_v40 = vrot.slane %v2078_v17, %v1785_v6 }
  0xf3   : > { %v741_v55 = vrot.slane %v740_v29, 1  ;;  %v785_v41 = vrot.slane %v2082_v19, 4  ;;  %v1194_v43 = vrot.slane %v1193_v10, 1  ;;  %v857_v45 = vsub.f32 %v1983_v0, %v778_v1 }
  0xf4   : > { %v825_v39 = vrot.slane %v824_v26, 1  ;;  %v2100_v47 = vmul.f32 0.17677669, %v673_v24  ;;  %v2102_v28 = vpop.eup %1689  ;;  %v858_v7 = vsub.f32 %v2024_v52, %v784_v21  ;;  %v830_v49 = vmax.f32 %v828_v2, %v829_v27 }
  0xf5   : > { %v742_v58 = vmax.f32 %v740_v29, %v741_v55  ;;  %v786_v46 = vmax.f32 %v2082_v19, %v785_v41  ;;  %v1199_v62 = vrot.slane %v2086_v63, 2  ;;  %v1252_v42 = vsel %vm604_vm0, %v1126_v35, 0.0 }
  0xf6   : > { %v941_v4 = vrot.slane %v2093_v37, 4  ;;  %v833_v57 = vrot.slane %v2100_v47, 4  ;;  %v1138_v0 = vrot.slane %v2090_v31, 1  ;;  %v2112_v5 = vsel %vm1325_vm1, %v1456_v36, %v1452_v53 }
  0xf7   : > { %v851_v59 = vsub.f32 %v2046_v12, %v742_v58  ;;  %v787_v52 = vrot.slane %v786_v46, 2  ;;  %v1248_v9 = vrot.slane %v1247_v34, 2  ;;  %v893_v2 = vmul.f32 1.442695, %v857_v45  ;;  %v652_v45 = vpop.xlane.xlu0 %651 }
  0xf8   : > { %v826_v60 = vmax.f32 %v824_v26, %v825_v39  ;;  %v834_v11 = vmax.f32 %v2100_v47, %v833_v57  ;;  %v895_v14 = vmul.f32 1.442695, %v858_v7  ;;  %v831_v15 = vrot.slane %v830_v49, 1 }
  0xf9   : > { %v881_v16 = vmul.f32 1.442695, %v851_v59  ;;  %v788_v17 = vmax.f32 %v786_v46, %v787_v52  ;;  %v1253_v18 = vrot.slane %v1252_v42, 4  ;;  %v942_v25 = vadd.f32 %v2093_v37, %v941_v4 }
  0xfa   : > { %v835_v1 = vrot.slane %v834_v11, 2  ;;  %v2117_v21 = vmul.f32 0.17677669, %v628_v8  ;;  %v2121_v12 = vadd.f32 %v1194_v43, %v1193_v10  ;;  %v1140_v27 = vsel %vm604_vm0, %v1110_v33, 0.0 }
  0xfb   : > { %v2119_v53 = vpop.eup %1691  ;;  %1693 = vpow2.f32 %v881_v16  ;;  %v789_v26 = vrot.slane %v788_v17, 1  ;;  %v865_v36 = vsub.f32 %v2010_v48, %v826_v60  ;;  %v832_v55 = vmax.f32 %v830_v49, %v831_v15  ;;  %v296_v60 = vld [vmem:[%s1994_s29 + $0x50] sm:$0xff] }
  0xfc   : > { %1695 = vpow2.f32 %v893_v2  ;;  %v947_v29 = vrot.slane %v2119_v53, 4  ;;  %v836_v24 = vmax.f32 %v834_v11, %v835_v1  ;;  %v743_v35 = vrot.slane %v2117_v21, 4  ;;  %v288_v16 = vld [vmem:[%s1994_s29 + $0x10] sm:$0xff] }
  0xfd   : > { %1697 = vpow2.f32 %v895_v14  ;;  %v790_v41 = vmax.f32 %v788_v17, %v789_v26  ;;  %v943_v39 = vrot.slane %v942_v25, 2  ;;  %v1200_v7 = vadd.f32 %v1199_v62, %v2086_v63 }
  0xfe   : > { %v948_v10 = vadd.f32 %v2119_v53, %v947_v29  ;;  %v837_v43 = vrot.slane %v836_v24, 1  ;;  %v744_v33 = vmax.f32 %v2117_v21, %v743_v35  ;;  %v1141_v58 = vrot.slane %v1140_v27, 4 }
  0xff   : > { %v2134_v46 = vsel %vm1325_vm1, %v1392_v40, %v1388_v22  ;;  %v859_v48 = vsub.f32 %v2082_v19, %v790_v41  ;;  %v2137_v49 = vadd.f32 %v1248_v9, %v1247_v34  ;;  %v2139_v59 = vmul.f32 0.17677669, %v652_v45 }
 0x100   : > { %v838_v4 = vmax.f32 %v836_v24, %v837_v43  ;;  %v745_v57 = vrot.slane %v744_v33, 2  ;;  %1699 = vrcp.f32 %v2080_v56  ;;  %v909_v63 = vmul.f32 1.442695, %v865_v36 }
 0x101   : > { %v949_v62 = vrot.slane %v948_v10, 2  ;;  %v897_v52 = vmul.f32 1.442695, %v859_v48  ;;  %v1254_v8 = vadd.f32 %v1253_v18, %v1252_v42  ;;  %v944_v32 = vadd.f32 %v943_v39, %v942_v25 }
 0x102   : > { %v866_v22 = vsub.f32 %v2042_v50, %v832_v55  ;;  %v746_v40 = vmax.f32 %v744_v33, %v745_v57  ;;  %v1201_v19 = vrot.slane %v1200_v7, 1  ;;  %v1142_v34 = vadd.f32 %v1141_v58, %v1140_v27 }
 0x103   : > { %v1082_v9 = vmul.f32 %v2063_v54, %v1966_v30  ;;  %v867_v2 = vsub.f32 %v2100_v47, %v838_v4  ;;  %v2149_v56 = vmul.f32 %v2084_v20, %v1969_v38  ;;  %1701 = vpow2.f32 %v897_v52 }
 0x104   : > { %v747_v11 = vrot.slane %v746_v40, 1  ;;  %v791_v42 = vrot.slane %v2139_v59, 4  ;;  %v2155_v50 = vadd.f32 %v1138_v0, %v2090_v31  ;;  %v1250_v15 = vrot.slane %v2137_v49, 1 }
 0x105   : > { %v2152_v14 = vpop.eup %1693  ;;  %1703 = vpow2.f32 %v909_v63  ;;  %v950_v30 = vadd.f32 %v949_v62, %v948_v10  ;;  %v1255_v47 = vrot.slane %v1254_v8, 2  ;;  %v945_v17 = vrot.slane %v944_v32, 1 }
 0x106   : > { %v2159_v54 = vpop.eup %1695  ;;  %v911_v38 = vmul.f32 1.442695, %v866_v22  ;;  %v953_v20 = vrot.slane %v2152_v14, 4  ;;  %v1119_v25 = vmul.f32 %v1082_v9, %v296_v60  ;;  %v1428_v1 = vrot.slane %v1082_v9, %v1785_v6  ;;  %v289_v9 = vld [vmem:[%s1994_s29 + $0x18] sm:$0xff] }
 0x107   : > { %v2162_v18 = vpop.eup %1697  ;;  %v913_v27 = vmul.f32 1.442695, %v867_v2  ;;  %v748_v31 = vmax.f32 %v746_v40, %v747_v11  ;;  %v1202_v0 = vadd.f32 %v1201_v19, %v1200_v7  ;;  %v1143_v26 = vrot.slane %v1142_v34, 2 }
 0x108   : > { %v1111_v29 = vmul.f32 %v2149_v56, %v288_v16  ;;  %v792_v24 = vmax.f32 %v2139_v59, %v791_v42  ;;  %v989_v35 = vrot.slane %v2159_v54, 4  ;;  %v951_v36 = vrot.slane %v950_v30, 1 }
 0x109   : > { %v954_v55 = vadd.f32 %v2152_v14, %v953_v20  ;;  %v852_v41 = vsub.f32 %v2117_v21, %v748_v31  ;;  %v2170_v45 = vadd.f32 %v1255_v47, %v1254_v8  ;;  %v1396_v39 = vrot.slane %v2149_v56, %v1785_v6 }
 0x10a   : > { %v946_v10 = vadd.f32 %v945_v17, %v944_v32  ;;  %1705 = vpow2.f32 %v911_v38  ;;  %v1700_v43 = vpop.eup %1699  ;;  %v995_v33 = vrot.slane %v2162_v18, 4  ;;  %v1203_v48 = vsel %vm604_vm0, %v1119_v25, 0.0  ;;  %v676_v17 = vpop.xlane.xlu1 %675  ;;  %v304_v38 = vld [vmem:[%s1994_s29 + $0x90] sm:$0xff] }
 0x10b   : > { %v955_v7 = vrot.slane %v954_v55, 2  ;;  %1707 = vpow2.f32 %v913_v27  ;;  %v883_v58 = vmul.f32 1.442695, %v852_v41  ;;  %v2178_v4 = vsel %vm1327_vm2, %v1428_v1, %v2073_v13 }
 0x10c   : > { %v1147_v21 = vsel %vm604_vm0, %v1111_v29, 0.0  ;;  %v793_v57 = vrot.slane %v792_v24, 2  ;;  %v990_v63 = vadd.f32 %v2159_v54, %v989_v35  ;;  %v952_v62 = vadd.f32 %v951_v36, %v950_v30 }
 0x10d   : > { %v956_v52 = vadd.f32 %v955_v7, %v954_v55  ;;  %1709 = vpow2.f32 %v883_v58  ;;  %v2182_v8 = vpop.eup %1701  ;;  %v1144_v32 = vadd.f32 %v1143_v26, %v1142_v34  ;;  %v2185_v22 = vmul.f32 %v1700_v43, %v1997_v23 }
 0x10e   : > { %v985_v40 = vrot.slane %v2061_v44, 2  ;;  %1711 = vrcp.f32 %v946_v10  ;;  %v1204_v19 = vrot.slane %v1203_v48, 4  ;;  %v996_v2 = vadd.f32 %v2162_v18, %v995_v33 }
 0x10f   : > { %v2188_v13 = vpop.eup %1703  ;;  %v957_v60 = vrot.slane %v956_v52, 1  ;;  %v1001_v56 = vrot.slane %v2182_v8, 4  ;;  %v2195_v11 = vsel %vm1325_vm1, %v1202_v0, %v2121_v12  ;;  %v1148_v34 = vrot.slane %v1147_v21, 4 }
 0x110   : > { %v2199_v23 = vmul.f32 %v2102_v28, %v1980_v61  ;;  %v794_v42 = vmax.f32 %v792_v24, %v793_v57  ;;  %v1031_v16 = vrot.slane %v2048_v3, 4  ;;  %v991_v30 = vrot.slane %v990_v63, 2 }
 0x111   : > { %1713 = vrcp.f32 %v952_v62  ;;  %v958_v47 = vadd.f32 %v957_v60, %v956_v52  ;;  %v1112_v20 = vmul.f32 %v2185_v22, %v289_v9  ;;  %v986_v25 = vadd.f32 %v985_v40, %v2061_v44 }
 0x112   : > { %v1037_v12 = vrot.slane %v2188_v13, 4  ;;  %v1002_v1 = vadd.f32 %v2182_v8, %v1001_v56  ;;  %v1145_v27 = vrot.slane %v1144_v32, 1  ;;  %v1205_v31 = vadd.f32 %v1204_v19, %v1203_v48 }
 0x113   : > { %v997_v61 = vrot.slane %v996_v2, 2  ;;  %1715 = vrcp.f32 %v958_v47  ;;  %v1257_v0 = vrot.slane %v2170_v45, 1  ;;  %v1149_v26 = vadd.f32 %v1148_v34, %v1147_v21 }
 0x114   : > { %v2207_v28 = vpop.eup %1705  ;;  %v795_v29 = vrot.slane %v794_v42, 1  ;;  %v2210_v24 = vmul.f32 0.17677669, %v676_v17  ;;  %v2216_v44 = vsel %vm1327_vm2, %v1396_v39, %v2134_v46  ;;  %v1127_v36 = vmul.f32 %v2199_v23, %v304_v38 }
 0x115   : > { %v2212_v35 = vpop.eup %1707  ;;  %v1032_v55 = vadd.f32 %v2048_v3, %v1031_v16  ;;  %v992_v41 = vadd.f32 %v991_v30, %v990_v63  ;;  %v1154_v10 = vsel %vm604_vm0, %v1112_v20, 0.0  ;;  %v987_v43 = vrot.slane %v986_v25, 1 }
 0x116   : > { %v1038_v33 = vadd.f32 %v2188_v13, %v1037_v12  ;;  %v1003_v7 = vrot.slane %v1002_v1, 2  ;;  %v2224_v48 = vadd.f32 %v1145_v27, %v1144_v32  ;;  %v1206_v21 = vrot.slane %v1205_v31, 2 }
 0x117   : > { %v2222_v58 = vpop.eup %1709  ;;  %v998_v57 = vadd.f32 %v997_v61, %v996_v2  ;;  %v1043_v46 = vrot.slane %v2207_v28, 4  ;;  %v1150_v62 = vrot.slane %v1149_v26, 2  ;;  %v1049_v52 = vrot.slane %v2212_v35, 4 }
 0x118   : > { %v1712_v39 = vpop.eup %1711  ;;  %v796_v40 = vmax.f32 %v794_v42, %v795_v29  ;;  %v839_v63 = vrot.slane %v2210_v24, 4  ;;  %v2230_v19 = vsel %vm604_vm0, %v1127_v36, 0.0  ;;  %v1155_v9 = vrot.slane %v1154_v10, 4 }
 0x119   : > { %v1033_v60 = vrot.slane %v1032_v55, 2  ;;  %v993_v56 = vrot.slane %v992_v41, 1  ;;  %v988_v34 = vadd.f32 %v987_v43, %v986_v25  ;;  %v1039_v32 = vrot.slane %v1038_v33, 2 }
 0x11a   : > { %v1004_v16 = vadd.f32 %v1003_v7, %v1002_v1  ;;  %v959_v2 = vrot.slane %v2222_v58, 4  ;;  %v2233_v47 = vadd.f32 %v1206_v21, %v1205_v31  ;;  %v2236_v17 = vmul.f32 %v1712_v39, %v2093_v37  ;;  %v290_v37 = vld [vmem:[%s1994_s29 + $0x20] sm:$0xff] }
 0x11b   : > { %v1714_v30 = vpop.eup %1713  ;;  %v999_v42 = vrot.slane %v998_v57, 1  ;;  %v1044_v38 = vadd.f32 %v2207_v28, %v1043_v46  ;;  %v1050_v20 = vadd.f32 %v2212_v35, %v1049_v52  ;;  %v860_v25 = vsub.f32 %v2139_v59, %v796_v40  ;;  %v291_v46 = vld [vmem:[%s1994_s29 + $0x28] sm:$0xff] }
 0x11c   : > { %v960_v12 = vadd.f32 %v2222_v58, %v959_v2  ;;  %v840_v1 = vmax.f32 %v2210_v24, %v839_v63  ;;  %v1151_v61 = vadd.f32 %v1150_v62, %v1149_v26  ;;  %v1156_v31 = vadd.f32 %v1155_v9, %v1154_v10  ;;  %v292_v26 = vld [vmem:[%s1994_s29 + $0x30] sm:$0xff] }
 0x11d   : > { %v1716_v27 = vpop.eup %1715  ;;  %v1034_v29 = vadd.f32 %v1033_v60, %v1032_v55  ;;  %v994_v36 = vadd.f32 %v993_v56, %v992_v41  ;;  %1717 = vrcp.f32 %v988_v34  ;;  %v1040_v43 = vadd.f32 %v1039_v32, %v1038_v33 }
 0x11e   : > { %v2245_v7 = vmul.f32 %v1714_v30, %v2119_v53  ;;  %v1005_v21 = vrot.slane %v1004_v16, 1  ;;  %v1000_v39 = vadd.f32 %v999_v42, %v998_v57  ;;  %v1045_v52 = vrot.slane %v1044_v38, 2 }
 0x11f   : > { %v2249_v59 = vmul.f32 %v1716_v27, %v2152_v14  ;;  %v961_v40 = vrot.slane %v960_v12, 2  ;;  %v1113_v63 = vmul.f32 %v2236_v17, %v290_v37  ;;  %v1051_v10 = vrot.slane %v1050_v20, 2 }
 0x120   : > { %v899_v55 = vmul.f32 1.442695, %v860_v25  ;;  %v841_v41 = vrot.slane %v840_v1, 2  ;;  %v1157_v62 = vrot.slane %v1156_v31, 2  ;;  %v1035_v9 = vrot.slane %v1034_v29, 1 }
 0x121   : > { %1719 = vrcp.f32 %v994_v36  ;;  %v962_v33 = vadd.f32 %v961_v40, %v960_v12  ;;  %v1260_v53 = vrot.slane %v2230_v19, 4  ;;  %v1041_v60 = vrot.slane %v1040_v43, 1 }
 0x122   : > { %v1114_v57 = vmul.f32 %v2245_v7, %v291_v46  ;;  %v1006_v56 = vadd.f32 %v1005_v21, %v1004_v16  ;;  %1721 = vrcp.f32 %v1000_v39  ;;  %v1046_v14 = vadd.f32 %v1045_v52, %v1044_v38 }
 0x123   : > { %v1115_v34 = vmul.f32 %v2249_v59, %v292_v26  ;;  %v963_v32 = vrot.slane %v962_v33, 1  ;;  %v1161_v2 = vsel %vm604_vm0, %v1113_v63, 0.0  ;;  %v1052_v30 = vadd.f32 %v1051_v10, %v1050_v20 }
 0x124   : > { %1723 = vpow2.f32 %v899_v55  ;;  %v842_v42 = vmax.f32 %v840_v1, %v841_v41  ;;  %v1152_v25 = vrot.slane %v1151_v61, 1  ;;  %v1158_v27 = vadd.f32 %v1157_v62, %v1156_v31 }
 0x125   : > { %v1036_v12 = vadd.f32 %v1035_v9, %v1034_v29  ;;  %v964_v36 = vadd.f32 %v963_v32, %v962_v33  ;;  %v1042_v37 = vadd.f32 %v1041_v60, %v1040_v43  ;;  %v1168_v40 = vsel %vm604_vm0, %v1114_v57, 0.0  ;;  %v298_v32 = vld [vmem:[%s1994_s29 + $0x60] sm:$0xff] }
 0x126   : > { %1725 = vrcp.f32 %v1006_v56  ;;  %v843_v46 = vrot.slane %v842_v42, 1  ;;  %v1162_v16 = vrot.slane %v1161_v2, 4  ;;  %v1047_v21 = vrot.slane %v1046_v14, 1 }
 0x127   : > { %v1175_v38 = vsel %vm604_vm0, %v1115_v34, 0.0  ;;  %1727 = vrcp.f32 %v964_v36  ;;  %v1718_v39 = vpop.eup %1717  ;;  %v1208_v52 = vrot.slane %v2233_v47, 1  ;;  %v1460_v20 = vrot.slane %v2199_v23, %v1785_v6 }
 0x128   : > { %v1053_v1 = vrot.slane %v1052_v30, 1  ;;  %v844_v31 = vmax.f32 %v842_v42, %v843_v46  ;;  %v1153_v29 = vadd.f32 %v1152_v25, %v1151_v61  ;;  %v1400_v43 = vrot.slane %v2185_v22, %v1785_v6 }
 0x129   : > { %1729 = vrcp.f32 %v1036_v12  ;;  %v1169_v63 = vrot.slane %v1168_v40, 4  ;;  %v1326_v26 = vsel %vm1325_vm1, %v2224_v48, %v2155_v50  ;;  %v1159_v10 = vrot.slane %v1158_v27, 1 }
 0x12a   : > { %v1176_v55 = vrot.slane %v1175_v38, 4  ;;  %v868_v41 = vsub.f32 %v2210_v24, %v844_v31  ;;  %v2269_v9 = vadd.f32 %v1260_v53, %v2230_v19  ;;  %v1163_v61 = vadd.f32 %v1162_v16, %v1161_v2  ;;  %v297_v19 = vld [vmem:[%s1994_s29 + $0x58] sm:$0xff] }
 0x12b   : > { %v1720_v62 = vpop.eup %1719  ;;  %1731 = vrcp.f32 %v1042_v37  ;;  %v1048_v33 = vadd.f32 %v1047_v21, %v1046_v14  ;;  %v2272_v22 = vadd.f32 %v1208_v52, %v2233_v47  ;;  %v2275_v60 = vmul.f32 %v1718_v39, %v2012_v51  ;;  %v299_v37 = vld [vmem:[%s1994_s29 + $0x68] sm:$0xff] }
 0x12c   : > { %v1054_v50 = vadd.f32 %v1053_v1, %v1052_v30  ;;  %v915_v48 = vmul.f32 1.442695, %v868_v41  ;;  %v1722_v57 = vpop.eup %1721  ;;  %v2278_v56 = vsel %vm1327_vm2, %v1153_v29, %v1326_v26  ;;  %v1483_v24 = vsel %vm1329_vm3, %v1400_v43, %v2216_v44  ;;  %v300_v29 = vld [vmem:[%s1994_s29 + $0x70] sm:$0xff] }
 0x12d   : > { %v1170_v53 = vadd.f32 %v1169_v63, %v1168_v40  ;;  %v2285_v34 = vadd.f32 %v1159_v10, %v1158_v27  ;;  %v2288_v51 = vmul.f32 %v1720_v62, %v2159_v54  ;;  %v1177_v47 = vadd.f32 %v1176_v55, %v1175_v38  ;;  %v293_v40 = vld [vmem:[%s1994_s29 + $0x38] sm:$0xff] }
 0x12e   : > { %v2283_v14 = vpop.eup %1723  ;;  %1733 = vpow2.f32 %v915_v48  ;;  %v1164_v2 = vrot.slane %v1163_v61, 2  ;;  %v1404_v30 = vrot.slane %v2236_v17, %v1785_v6  ;;  %v1120_v25 = vmul.f32 %v2275_v60, %v297_v19 }
 0x12f   : > { %1735 = vrcp.f32 %v1048_v33  ;;  %v1007_v44 = vrot.slane %v2283_v14, 4  ;;  %v1408_v27 = vrot.slane %v2245_v7, %v1785_v6  ;;  %v2298_v54 = vmul.f32 %v1722_v57, %v2162_v18 }
 0x130   : > { %v1726_v42 = vpop.eup %1725  ;;  %1737 = vrcp.f32 %v1054_v50  ;;  %v1171_v36 = vrot.slane %v1170_v53, 2  ;;  %v1412_v17 = vrot.slane %v2249_v59, %v1785_v6  ;;  %v1121_v16 = vmul.f32 %v2288_v51, %v298_v32  ;;  %v305_v50 = vld [vmem:[%s1994_s29 + $0x98] sm:$0xff] }
 0x131   : > { %v1728_v12 = vpop.eup %1727  ;;  %v1008_v46 = vadd.f32 %v2283_v14, %v1007_v44  ;;  %v1178_v21 = vrot.slane %v1177_v47, 2  ;;  %v1165_v38 = vadd.f32 %v1164_v2, %v1163_v61  ;;  %v1484_v39 = vsel %vm1331_vm4, %v1404_v30, %v1483_v24  ;;  %v306_v44 = vld [vmem:[%s1994_s29 + $0xa0] sm:$0xff] }
 0x132   : > { %v1076_v18 = vmul.f32 %v1728_v12, %v2222_v58  ;;  %v2309_v52 = vmul.f32 %v1726_v42, %v2182_v8  ;;  %v1485_v59 = vsel %vm1333_vm5, %v1408_v27, %v1484_v39  ;;  %v1122_v31 = vmul.f32 %v2298_v54, %v299_v37 }
 0x133   : > { %v1730_v7 = vpop.eup %1729  ;;  %v1009_v1 = vrot.slane %v1008_v46, 2  ;;  %v1210_v8 = vsel %vm604_vm0, %v1120_v25, 0.0  ;;  %v1172_v26 = vadd.f32 %v1171_v36, %v1170_v53  ;;  %v1486_v10 = vsel %vm1335_vm6, %v1412_v17, %v1485_v59 }
 0x134   : > { %v1116_v58 = vmul.f32 %v1076_v18, %v293_v40  ;;  %v1416_v43 = vrot.slane %v1076_v18, %v1785_v6  ;;  %v2324_v41 = vmul.f32 %v1730_v7, %v2048_v3  ;;  %v1179_v62 = vadd.f32 %v1178_v21, %v1177_v47 }
 0x135   : > { %v1732_v63 = vpop.eup %1731  ;;  %v1010_v55 = vadd.f32 %v1009_v1, %v1008_v46  ;;  %v1217_v48 = vsel %vm604_vm0, %v1121_v16, 0.0  ;;  %v1123_v57 = vmul.f32 %v2309_v52, %v300_v29  ;;  %v1432_v3 = vrot.slane %v2275_v60, %v1785_v6 }
 0x136   : > { %v1182_v61 = vsel %vm604_vm0, %v1116_v58, 0.0  ;;  %v1487_v33 = vsel %vm1337_vm7, %v1416_v43, %v1486_v10  ;;  %v1166_v32 = vrot.slane %v1165_v38, 1  ;;  %v2338_v47 = vmul.f32 %v1732_v63, %v2188_v13 }
 0x137   : > { %v1183_v24 = vrot.slane %v1182_v61, 4  ;;  %1506 = vst.msk [vmem:[%s2315_s6] sm:$0xff] %vm1505_vm8, %v1487_v33  ;;  %v1011_v19 = vrot.slane %v1010_v55, 1  ;;  %v1224_v2 = vsel %vm604_vm0, %v1122_v31, 0.0  ;;  %v1173_v42 = vrot.slane %v1172_v26, 1  ;;  %v307_v31 = vld [vmem:[%s1994_s29 + $0xa8] sm:$0xff] }
 0x138   : > { %v2333_v53 = vpop.eup %1733  ;;  %v1211_v37 = vrot.slane %v1210_v8, 4  ;;  %v1128_v17 = vmul.f32 %v2324_v41, %v305_v50  ;;  %v1218_v40 = vrot.slane %v1217_v48, 4  ;;  %v1180_v46 = vrot.slane %v1179_v62, 1 }
 0x139   : > { %v1736_v30 = vpop.eup %1735  ;;  %v1184_v25 = vadd.f32 %v1183_v24, %v1182_v61  ;;  %v1012_v27 = vadd.f32 %v1011_v19, %v1010_v55  ;;  %v1055_v12 = vrot.slane %v2333_v53, 4  ;;  %v1231_v16 = vsel %vm604_vm0, %v1123_v57, 0.0  ;;  %v308_v61 = vld [vmem:[%s1994_s29 + $0xb0] sm:$0xff] }
 0x13a   : > { %v1738_v36 = vpop.eup %1737  ;;  %v1167_v18 = vadd.f32 %v1166_v32, %v1165_v38  ;;  %v1129_v7 = vmul.f32 %v2338_v47, %v306_v44  ;;  %v1225_v39 = vrot.slane %v1224_v2, 4  ;;  %v2348_v1 = vmul.f32 %v1736_v30, %v2207_v28 }
 0x13b   : > { %v1185_v13 = vrot.slane %v1184_v25, 2  ;;  %1739 = vrcp.f32 %v1012_v27  ;;  %v1056_v21 = vadd.f32 %v2333_v53, %v1055_v12  ;;  %v1174_v59 = vadd.f32 %v1173_v42, %v1172_v26 }
 0x13c   : > { %v2352_v29 = vmul.f32 %v1738_v36, %v2212_v35  ;;  %v1330_v63 = vsel %vm1329_vm3, %v2285_v34, %v2278_v56  ;;  %v1212_v10 = vadd.f32 %v1211_v37, %v1210_v8  ;;  %v1181_v38 = vadd.f32 %v1180_v46, %v1179_v62 }
 0x13d   : > { %v1186_v58 = vadd.f32 %v1185_v13, %v1184_v25  ;;  %v1057_v43 = vrot.slane %v1056_v21, 2  ;;  %v1232_v55 = vrot.slane %v1231_v16, 4  ;;  %v1266_v33 = vsel %vm604_vm0, %v1128_v17, 0.0  ;;  %v301_v13 = vld [vmem:[%s1994_s29 + $0x78] sm:$0xff] }
 0x13e   : > { %v1219_v28 = vadd.f32 %v1218_v40, %v1217_v48  ;;  %v1332_v57 = vsel %vm1331_vm4, %v1167_v18, %v1330_v63  ;;  %v1273_v35 = vsel %vm604_vm0, %v1129_v7, 0.0  ;;  %v1226_v24 = vadd.f32 %v1225_v39, %v1224_v2 }
 0x13f   : > { %v1187_v50 = vrot.slane %v1186_v58, 1  ;;  %v1058_v26 = vadd.f32 %v1057_v43, %v1056_v21  ;;  %v1130_v19 = vmul.f32 %v2348_v1, %v307_v31  ;;  %v1334_v56 = vsel %vm1333_vm5, %v1174_v59, %v1332_v57 }
 0x140   : > { %v1131_v34 = vmul.f32 %v2352_v29, %v308_v61  ;;  %v1213_v48 = vrot.slane %v1212_v10, 2  ;;  %v1267_v32 = vrot.slane %v1266_v33, 4  ;;  %v1336_v30 = vsel %vm1335_vm6, %v1181_v38, %v1334_v56 }
 0x141   : > { %v1188_v8 = vadd.f32 %v1187_v50, %v1186_v58  ;;  %v1059_v62 = vrot.slane %v1058_v26, 1  ;;  %v1233_v2 = vadd.f32 %v1232_v55, %v1231_v16  ;;  %v1220_v44 = vrot.slane %v1219_v28, 2 }
 0x142   : > { %v1436_v42 = vrot.slane %v2288_v51, %v1785_v6  ;;  %v1262_v12 = vrot.slane %v2269_v9, 2  ;;  %v1274_v36 = vrot.slane %v1273_v35, 4  ;;  %v1440_v37 = vrot.slane %v2298_v54, %v1785_v6 }
 0x143   : > { %v1338_v25 = vsel %vm1337_vm7, %v1188_v8, %v1336_v30  ;;  %v1060_v27 = vadd.f32 %v1059_v62, %v1058_v26  ;;  %v1280_v17 = vsel %vm604_vm0, %v1130_v19, 0.0  ;;  %v1227_v46 = vrot.slane %v1226_v24, 2 }
 0x144   : > { %1356 = vst.msk [vmem:[%s2366_s9] sm:$0xff] %vm604_vm0, %v1338_v25  ;;  %v1444_v16 = vrot.slane %v2309_v52, %v1785_v6  ;;  %v1287_v51 = vsel %vm604_vm0, %v1131_v34, 0.0  ;;  %v1214_v21 = vadd.f32 %v1213_v48, %v1212_v10  ;;  %v1490_v54 = vsel %vm1329_vm3, %v1432_v3, %v2178_v4 }
 0x145   : > { %v1740_v40 = vpop.eup %1739  ;;  %1741 = vrcp.f32 %v1060_v27  ;;  %v1234_v18 = vrot.slane %v1233_v2, 2  ;;  %v1268_v39 = vadd.f32 %v1267_v32, %v1266_v33  ;;  %v1221_v59 = vadd.f32 %v1220_v44, %v1219_v28 }
 0x146   : > { %v1092_v7 = vmul.f32 %v1740_v40, %v2283_v14  ;;  %v1491_v31 = vsel %vm1331_vm4, %v1436_v42, %v1490_v54  ;;  %v1281_v58 = vrot.slane %v1280_v17, 4  ;;  %v1288_v43 = vrot.slane %v1287_v51, 4 }
 0x147   : > { %v1492_v52 = vsel %vm1333_vm5, %v1440_v37, %v1491_v31  ;;  %v1263_v38 = vadd.f32 %v1262_v12, %v2269_v9  ;;  %v1275_v60 = vadd.f32 %v1274_v36, %v1273_v35  ;;  %v1228_v55 = vadd.f32 %v1227_v46, %v1226_v24 }
 0x148   : > { %v1124_v63 = vmul.f32 %v1092_v7, %v301_v13  ;;  %v1448_v10 = vrot.slane %v1092_v7, %v1785_v6  ;;  %v1493_v4 = vsel %vm1335_vm6, %v1444_v16, %v1492_v52  ;;  %v1464_v14 = vrot.slane %v2324_v41, %v1785_v6 }
 0x149   : > { %v1235_v3 = vadd.f32 %v1234_v18, %v1233_v2  ;;  %v1496_v28 = vsel %vm1327_vm2, %v1460_v20, %v2112_v5  ;;  %v1215_v50 = vrot.slane %v1214_v21, 1  ;;  %v1282_v9 = vadd.f32 %v1281_v58, %v1280_v17  ;;  %v309_v2 = vld [vmem:[%s1994_s29 + $0xb8] sm:$0xff] }
 0x14a   : > { %v1238_v61 = vsel %vm604_vm0, %v1124_v63, 0.0  ;;  %v1494_v33 = vsel %vm1337_vm7, %v1448_v10, %v1493_v4  ;;  %v1340_v41 = vsel %vm1327_vm2, %v2272_v22, %v2195_v11  ;;  %v1269_v57 = vrot.slane %v1268_v39, 2 }
 0x14b   : > { %v1239_v26 = vrot.slane %v1238_v61, 4  ;;  %1507 = vst.msk [vmem:[%s2315_s6 + $0x8] sm:$0xff] %vm1505_vm8, %v1494_v33  ;;  %v1222_v35 = vrot.slane %v1221_v59, 1  ;;  %v1289_v24 = vadd.f32 %v1288_v43, %v1287_v51  ;;  %v1276_v19 = vrot.slane %v1275_v60, 2 }
 0x14c   : > { %v1468_v56 = vrot.slane %v2338_v47, %v1785_v6  ;;  %v1229_v23 = vrot.slane %v1228_v55, 1  ;;  %v1264_v5 = vrot.slane %v1263_v38, 1  ;;  %v1497_v20 = vsel %vm1329_vm3, %v1464_v14, %v1496_v28 }
 0x14d   : > { %v1240_v34 = vadd.f32 %v1239_v26, %v1238_v61  ;;  %v1472_v8 = vrot.slane %v2348_v1, %v1785_v6  ;;  %v1236_v62 = vrot.slane %v1235_v3, 1  ;;  %v1216_v32 = vadd.f32 %v1215_v50, %v1214_v21 }
 0x14e   : > { %v1283_v11 = vrot.slane %v1282_v9, 2  ;;  %v1476_v22 = vrot.slane %v2352_v29, %v1785_v6  ;;  %v1270_v44 = vadd.f32 %v1269_v57, %v1268_v39  ;;  %v1223_v42 = vadd.f32 %v1222_v35, %v1221_v59 }
 0x14f   : > { %v1742_v48 = vpop.eup %1741  ;;  %v1241_v30 = vrot.slane %v1240_v34, 2  ;;  %v1290_v47 = vrot.slane %v1289_v24, 2  ;;  %v1277_v27 = vadd.f32 %v1276_v19, %v1275_v60  ;;  %v1498_v12 = vsel %vm1331_vm4, %v1468_v56, %v1497_v20 }
 0x150   : > { %v1108_v25 = vmul.f32 %v1742_v48, %v2333_v53  ;;  %v1230_v36 = vadd.f32 %v1229_v23, %v1228_v55  ;;  %v1499_v1 = vsel %vm1333_vm5, %v1472_v8, %v1498_v12  ;;  %v1237_v17 = vadd.f32 %v1236_v62, %v1235_v3 }
 0x151   : > { %v1242_v37 = vadd.f32 %v1241_v30, %v1240_v34  ;;  %v1341_v29 = vsel %vm1329_vm3, %v1216_v32, %v1340_v41  ;;  %v1284_v16 = vadd.f32 %v1283_v11, %v1282_v9  ;;  %v1500_v51 = vsel %vm1335_vm6, %v1476_v22, %v1499_v1 }
 0x152   : > { %v1132_v40 = vmul.f32 %v1108_v25, %v309_v2  ;;  %v1480_v46 = vrot.slane %v1108_v25, %v1785_v6  ;;  %v1342_v53 = vsel %vm1331_vm4, %v1223_v42, %v1341_v29  ;;  %v1291_v21 = vadd.f32 %v1290_v47, %v1289_v24 }
 0x153   : > { %v1243_v13 = vrot.slane %v1242_v37, 1  ;;  %v1271_v7 = vrot.slane %v1270_v44, 1  ;;  %v1343_v39 = vsel %vm1333_vm5, %v1230_v36, %v1342_v53  ;;  %v1278_v6 = vrot.slane %v1277_v27, 1 }
 0x154   : > { %v1294_v54 = vsel %vm604_vm0, %v1132_v40, 0.0  ;;  %v1501_v18 = vsel %vm1337_vm7, %v1480_v46, %v1500_v51  ;;  %v1344_v58 = vsel %vm1335_vm6, %v1237_v17, %v1343_v39  ;;  %v1258_v52 = vadd.f32 %v1257_v0, %v2170_v45 }
 0x155   : > { %v1244_v59 = vadd.f32 %v1243_v13, %v1242_v37  ;;  %v1295_v31 = vrot.slane %v1294_v54, 4  ;;  %1508 = vst.msk [vmem:[%s2315_s6 + $0x10] sm:$0xff] %vm1505_vm8, %v1501_v18  ;;  %v1285_v43 = vrot.slane %v1284_v16, 1  ;;  %v1265_v60 = vadd.f32 %v1264_v5, %v1263_v38 }
 0x156   : > { %v1292_v55 = vrot.slane %v1291_v21, 1  ;;  %v1251_v4 = vadd.f32 %v1250_v15, %v2137_v49  ;;  %v1272_v14 = vadd.f32 %v1271_v7, %v1270_v44  ;;  %v1279_v61 = vadd.f32 %v1278_v6, %v1277_v27 }
 0x157   : > { %v1345_v63 = vsel %vm1337_vm7, %v1244_v59, %v1344_v58  ;;  %v1296_v10 = vadd.f32 %v1295_v31, %v1294_v54  ;;  %v1286_v28 = vadd.f32 %v1285_v43, %v1284_v16 }
 0x158   : > { %1357 = vst.msk [vmem:[%s2366_s9 + $0x8] sm:$0xff] %vm604_vm0, %v1345_v63  ;;  %v1346_v33 = vsel %vm1325_vm1, %v1258_v52, %v1251_v4  ;;  %v1293_v50 = vadd.f32 %v1292_v55, %v1291_v21 }
 0x159   : > { %v1297_v3 = vrot.slane %v1296_v10, 2  ;;  %v1347_v0 = vsel %vm1327_vm2, %v1265_v60, %v1346_v33 }
 0x15a   : > { %v1348_v38 = vsel %vm1329_vm3, %v1272_v14, %v1347_v0 }
 0x15b   : > { %v1298_v45 = vadd.f32 %v1297_v3, %v1296_v10  ;;  %v1349_v26 = vsel %vm1331_vm4, %v1279_v61, %v1348_v38 }
 0x15c   : > { %v1350_v41 = vsel %vm1333_vm5, %v1286_v28, %v1349_v26 }
 0x15d   : > { %v1299_v9 = vrot.slane %v1298_v45, 1  ;;  %v1351_v49 = vsel %vm1335_vm6, %v1293_v50, %v1350_v41 }
 0x15f   : > { %v1300_v57 = vadd.f32 %v1299_v9, %v1298_v45 }
 0x161   : > { %v1352_v15 = vsel %vm1337_vm7, %v1300_v57, %v1351_v49 }
 0x162   : > { %1358 = vst.msk [vmem:[%s2366_s9 + $0x10] sm:$0xff] %vm604_vm0, %v1352_v15 }
 0x163 PF: > { %s15_s15 = sadd.s32 1, %s1749_s15  }
 0x164   : > { %p12_p5 = scmp.ge.s32.totalorder %s15_s15, 4  }
 0x166   :  { %14 = sbr.rel (!%p12_p5) target bundleno = 1 (0x1), region = 80 }

</bundles_post_ra>
